<compile_context>
chip_gen: v7x
topology: tpu7x:2x2x1
jax: 0.10.0
libtpu: 0.0.40
codegen_flags: <defaults>
</compile_context>

<pallas_src>
import functools
import math

import jax
import jax.numpy as jnp
from jax import lax
from jax.experimental import pallas as pl
from jax.experimental.pallas import tpu as pltpu


# dot_general dimension numbers for 2-D operands.
TN_DIMS = (((0,), (0,)), ((), ()))   # contract dim 0 of both:  A^T @ B
NT_DIMS = (((1,), (1,)), ((), ()))   # contract dim 1 of both:  A @ B^T


def _vmem_limit_bytes(B, C_in, C_out, N):
    f32 = 4
    need = (
        B * C_in * N * f32            # x block
        + C_in * C_out * f32          # weight
        + 2 * C_out * f32             # gamma / beta
        + 2 * B * C_out * N * f32     # output block + activation scratch
        + 3 * N * N * f32             # sim + exp(sim) + adj (per batch element)
        + C_out * B * N * f32         # batched support
    )
    # Generous headroom for double-buffering / relayouts; clamp below v7x's 64 MiB
    # physical VMEM (v5e/v6e have 128 MiB, so this is always safe).
    return int(min(max(8 * need, 16 * 1024 * 1024), 48 * 1024 * 1024))


# ---------------------------------------------------------------------------
# Fused kernel: for each batch element
#   adj = softmax(x x^T);  y_b = relu(adj @ (x W)) in channel-major (C_out, N)
# activation kept in VMEM scratch, BN stats accumulated in registers, then one
# hoisted scale/shift and a single normalized NCW write.
# ---------------------------------------------------------------------------
def gcn_bn_fused_kernel(x_ref, w_ref, gamma_ref, beta_ref, o_ref, y_ref, *,
                        inv_count, eps):
    B, _, N = x_ref.shape
    C_out = w_ref.shape[1]

    wb = w_ref[...].astype(jnp.bfloat16)                       # (C_in, C_out)

    # Per-batch NCW slices; keep an f32 copy for the similarity logits and a bf16 copy
    # for the MXU support matmul.
    x_f32 = [x_ref[b] for b in range(B)]                       # each (C_in, N) f32
    x_bf = [v.astype(jnp.bfloat16) for v in x_f32]

    # Batched support matmul across B:  sup_t_all[:, b*N:(b+1)*N] = W^T @ x_b
    x_cat = jnp.concatenate(x_bf, axis=1)                      # (C_in, B*N) bf16
    sup_t_all = lax.dot_general(wb, x_cat, TN_DIMS,
                                preferred_element_type=jnp.float32)   # (C_out, B*N)

    bsum = jnp.zeros((C_out, 1), jnp.float32)
    bssq = jnp.zeros((C_out, 1), jnp.float32)

    for b in range(B):                                          # B=2, fully unrolled
        # Similarity logits in f32 (exp amplifies logit error): sim[i,j] = sum_c x[c,i]x[c,j]
        sim = lax.dot_general(x_f32[b], x_f32[b], TN_DIMS,
                              preferred_element_type=jnp.float32)       # (N, N)
        sim = sim - jnp.max(sim, axis=-1, keepdims=True)
        p = jnp.exp(sim)                                                # un-normalized
        # Deferred softmax normalization: EUP reciprocal + multiply; the normalized
        # adjacency only exists as the bf16 MXU operand.
        inv = pl.reciprocal(jnp.sum(p, axis=-1, keepdims=True), approx=True)
        adj_bf = (p * inv).astype(jnp.bfloat16)                         # (N, N)

        sup_t = sup_t_all[:, b * N:(b + 1) * N].astype(jnp.bfloat16)    # (C_out, N)
        # out^T[c, i] = sum_j sup_t[c, j] * adj[i, j]   -> (C_out, N) == NCW slice
        out_t = lax.dot_general(sup_t, adj_bf, NT_DIMS,
                                preferred_element_type=jnp.float32)
        y = jnp.maximum(out_t, 0.0)                                     # ReLU

        y_ref[b] = y                                                    # VMEM scratch
        bsum = bsum + jnp.sum(y, axis=1, keepdims=True)                 # (C_out, 1)
        bssq = bssq + jnp.sum(y * y, axis=1, keepdims=True)

    # Train-mode batch statistics (biased variance, eps=1e-5), hoisted out of the
    # per-element normalize loop as a single per-channel scale/shift.
    mean = bsum * inv_count                                             # (C_out, 1)
    var = jnp.maximum(bssq * inv_count - mean * mean, 0.0)
    scale = gamma_ref[...] * lax.rsqrt(var + eps)                       # (C_out, 1)
    shift = beta_ref[...] - mean * scale                                # (C_out, 1)

    for b in range(B):
        o_ref[b] = y_ref[b] * scale + shift


# ---------------------------------------------------------------------------
# Wrapper — no transposes; kernel consumes and produces the PyTorch NCW layout.
# ---------------------------------------------------------------------------
def graph_convolution_forward(x_ncw, weight, bn_gamma, bn_beta, *, eps=1e-5):
    """x_ncw: (B, C_in, N) like PyTorch. Returns (B, C_out, N) like PyTorch."""
    x_ncw = x_ncw.astype(jnp.float32)
    weight = weight.astype(jnp.float32)
    B, C_in, N = x_ncw.shape
    C_out = weight.shape[1]

    kern = functools.partial(gcn_bn_fused_kernel,
                             inv_count=1.0 / float(B * N), eps=float(eps))

    # TODO(synk): eval-mode running_mean/running_var buffer updates are not tracked; this
    # is the train-mode batch-statistics BatchNorm1d path only (matches forward in train()).
    return pl.pallas_call(
        kern,
        out_shape=jax.ShapeDtypeStruct((B, C_out, N), jnp.float32),
        grid_spec=pltpu.PrefetchScalarGridSpec(
            num_scalar_prefetch=0,
            grid=(1,),                                   # single step: batch loop is in-kernel
            in_specs=[
                pl.BlockSpec((B, C_in, N), lambda i: (0, 0, 0)),
                pl.BlockSpec((C_in, C_out), lambda i: (0, 0)),
                pl.BlockSpec((C_out, 1), lambda i: (0, 0)),
                pl.BlockSpec((C_out, 1), lambda i: (0, 0)),
            ],
            out_specs=pl.BlockSpec((B, C_out, N), lambda i: (0, 0, 0)),
            scratch_shapes=[pltpu.VMEM((B, C_out, N), jnp.float32)],   # ReLU activation
        ),
        compiler_params=pltpu.CompilerParams(
            dimension_semantics=("arbitrary",),          # fused cross-batch BN reduction
            vmem_limit_bytes=_vmem_limit_bytes(B, C_in, C_out, N),
        ),
    )(x_ncw, weight, bn_gamma, bn_beta)


def init_params(key, in_features, out_features):
    stdv = 1.0 / math.sqrt(out_features)
    weight = jax.random.uniform(
        key, (in_features, out_features), dtype=jnp.float32,
        minval=-stdv, maxval=stdv)
    # Module's __init__: nn.init.constant_(bn.weight, 0), constant_(bn.bias, 0)
    bn_gamma = jnp.zeros((out_features, 1), jnp.float32)
    bn_beta = jnp.zeros((out_features, 1), jnp.float32)
    return weight, bn_gamma, bn_beta


# Pure-JAX f32 reference of the PyTorch forward (train-mode BN, biased variance).
def reference_forward(x_ncw, weight, gamma, beta, eps=1e-5):
    x = jnp.transpose(x_ncw, (0, 2, 1)).astype(jnp.float32)       # (B, N, C_in)
    adj = jax.nn.softmax(jnp.einsum('bic,bjc->bij', x, x), axis=-1)
    sup = jnp.einsum('bnc,co->bno', x, weight)
    out = jnp.transpose(jnp.einsum('bij,bjo->bio', adj, sup), (0, 2, 1))   # (B, C_out, N)
    y = jnp.maximum(out, 0.0)
    mean = jnp.mean(y, axis=(0, 2), keepdims=True)
    var = jnp.mean(jnp.square(y), axis=(0, 2), keepdims=True) - jnp.square(mean)
    g = gamma.reshape(1, -1, 1)
    b = beta.reshape(1, -1, 1)
    return (y - mean) * lax.rsqrt(var + eps) * g + b


if __name__ == "__main__":
    B, C_in, C_out, N = 2, 32, 32, 8   # (batch, in_features, out_features, n_class)

    key = jax.random.PRNGKey(0)
    k_x, k_w = jax.random.split(key)
    x = jax.random.normal(k_x, (B, C_in, N), dtype=jnp.float32)    # PyTorch NCW input
    weight, bn_gamma, bn_beta = init_params(k_w, C_in, C_out)

    # Module init (gamma=0, beta=0): forward output is identically zero.
    out = graph_convolution_forward(x, weight, bn_gamma, bn_beta)
    out = jax.block_until_ready(out)
    assert out.shape == (B, C_out, N), out.shape
    assert bool(jnp.all(out == 0.0))

    # gamma=1 path: value check against a pure-JAX f32 reference (kernel's wide matmuls
    # are bf16 on the MXU with f32 accumulation, so tolerance is ~bf16-level).
    gamma1 = jnp.ones_like(bn_gamma)
    out2 = jax.block_until_ready(graph_convolution_forward(x, weight, gamma1, bn_beta))
    ref2 = reference_forward(x, weight, gamma1, bn_beta)
    assert out2.shape == (B, C_out, N)
    assert bool(jnp.all(jnp.isfinite(out2)))
    max_err = float(jnp.max(jnp.abs(out2 - ref2)))
    assert bool(jnp.allclose(out2, ref2, atol=3e-2, rtol=3e-2)), f"max_abs_err={max_err}"

    print("KERNEL_OK")
</pallas_src>

<mosaic_0001>
module attributes {stable_mosaic.version = 11 : i64} {
  func.func @gcn_bn_fused_kernel(%arg0: i32, %arg1: memref<2x32x8xf32, #tpu.memory_space<vmem>>, %arg2: memref<32x32xf32, #tpu.memory_space<vmem>>, %arg3: memref<32x1xf32, #tpu.memory_space<vmem>>, %arg4: memref<32x1xf32, #tpu.memory_space<vmem>>, %arg5: memref<2x32x8xf32, #tpu.memory_space<vmem>>, %arg6: memref<2x32x8xf32, #tpu.memory_space<vmem>>) attributes {dimension_semantics = [#tpu.dimension_semantics<arbitrary>], iteration_bounds = array<i64: 1>, scalar_prefetch = 0 : i64, scratch_operands = 1 : i64, tpu.core_type = #tpu.core_type<tc>, window_params = [{pipeline_mode = #tpu.pipeline_mode<synchronous>, transform_indices = @transform_0, window_bounds = array<i64: 2, 32, 8>}, {pipeline_mode = #tpu.pipeline_mode<synchronous>, transform_indices = @transform_1, window_bounds = array<i64: 32, 32>}, {pipeline_mode = #tpu.pipeline_mode<synchronous>, transform_indices = @transform_2, window_bounds = array<i64: 32, 1>}, {pipeline_mode = #tpu.pipeline_mode<synchronous>, transform_indices = @transform_3, window_bounds = array<i64: 32, 1>}, {pipeline_mode = #tpu.pipeline_mode<synchronous>, transform_indices = @transform_4, window_bounds = array<i64: 2, 32, 8>}]} {
    %c0 = arith.constant 0 : index
    %c0_0 = arith.constant 0 : index
    %0 = vector.load %arg2[%c0, %c0_0] : memref<32x32xf32, #tpu.memory_space<vmem>>, vector<32x32xf32>
    %1 = arith.truncf %0 : vector<32x32xf32> to vector<32x32xbf16>
    %c0_1 = arith.constant 0 : index
    %c0_2 = arith.constant 0 : index
    %c0_3 = arith.constant 0 : index
    %2 = vector.load %arg1[%c0_1, %c0_2, %c0_3] : memref<2x32x8xf32, #tpu.memory_space<vmem>>, vector<1x32x8xf32>
    %3 = vector.shape_cast %2 : vector<1x32x8xf32> to vector<32x8xf32>
    %c1 = arith.constant 1 : index
    %c0_4 = arith.constant 0 : index
    %c0_5 = arith.constant 0 : index
    %4 = vector.load %arg1[%c1, %c0_4, %c0_5] : memref<2x32x8xf32, #tpu.memory_space<vmem>>, vector<1x32x8xf32>
    %5 = vector.shape_cast %4 : vector<1x32x8xf32> to vector<32x8xf32>
    %6 = arith.truncf %3 : vector<32x8xf32> to vector<32x8xbf16>
    %7 = arith.truncf %5 : vector<32x8xf32> to vector<32x8xbf16>
    %8 = tpu.concatenate %6, %7 in 1 : vector<32x8xbf16>, vector<32x8xbf16> -> vector<32x16xbf16>
    %cst = arith.constant dense<0.000000e+00> : vector<32x16xf32>
    %9 = tpu.matmul %1, %8, %cst {dimension_numbers = #tpu.dot_dimension_numbers<[0], [0], [1], [1], [0, 1, 1, 1], [], []>} : vector<32x32xbf16>, vector<32x16xbf16>, vector<32x16xf32> -> vector<32x16xf32>
    %cst_6 = arith.constant 0.000000e+00 : f32
    %10 = vector.broadcast %cst_6 : f32 to vector<32x1xf32>
    %cst_7 = arith.constant 0.000000e+00 : f32
    %11 = vector.broadcast %cst_7 : f32 to vector<32x1xf32>
    %cst_8 = arith.constant dense<0.000000e+00> : vector<8x8xf32>
    %12 = tpu.matmul %3, %3, %cst_8 {dimension_numbers = #tpu.dot_dimension_numbers<[0], [0], [1], [1], [0, 1, 1, 1], [], []>} : vector<32x8xf32>, vector<32x8xf32>, vector<8x8xf32> -> vector<8x8xf32>
    %cst_9 = arith.constant dense<0xFF800000> : vector<8xf32>
    %13 = vector.multi_reduction <maximumf>, %12, %cst_9 [1] : vector<8x8xf32> to vector<8xf32>
    %14 = vector.shape_cast %13 : vector<8xf32> to vector<8x1xf32>
    %15 = vector.broadcast %14 : vector<8x1xf32> to vector<8x8xf32>
    %16 = arith.subf %12, %15 : vector<8x8xf32>
    %17 = math.exp %16 : vector<8x8xf32>
    %cst_10 = arith.constant dense<0.000000e+00> : vector<8xf32>
    %18 = vector.multi_reduction <add>, %17, %cst_10 [1] : vector<8x8xf32> to vector<8xf32>
    %19 = vector.shape_cast %18 : vector<8xf32> to vector<8x1xf32>
    %20 = tpu.reciprocal %19 {approx = true} : vector<8x1xf32> -> vector<8x1xf32>
    %21 = vector.broadcast %20 : vector<8x1xf32> to vector<8x8xf32>
    %22 = arith.mulf %17, %21 : vector<8x8xf32>
    %23 = arith.truncf %22 : vector<8x8xf32> to vector<8x8xbf16>
    %24 = vector.extract_strided_slice %9 {offsets = [0, 0], sizes = [32, 8], strides = [1, 1]} : vector<32x16xf32> to vector<32x8xf32>
    %25 = arith.truncf %24 : vector<32x8xf32> to vector<32x8xbf16>
    %cst_11 = arith.constant dense<0.000000e+00> : vector<32x8xf32>
    %26 = tpu.matmul %25, %23, %cst_11 {dimension_numbers = #tpu.dot_dimension_numbers<[1], [1], [0], [0], [0, 0, 1, 0], [], []>} : vector<32x8xbf16>, vector<8x8xbf16>, vector<32x8xf32> -> vector<32x8xf32>
    %cst_12 = arith.constant 0.000000e+00 : f32
    %27 = vector.broadcast %cst_12 : f32 to vector<32x8xf32>
    %28 = arith.maximumf %26, %27 : vector<32x8xf32>
    %c0_13 = arith.constant 0 : index
    %c0_14 = arith.constant 0 : index
    %c0_15 = arith.constant 0 : index
    %29 = vector.load %arg6[%c0_13, %c0_14, %c0_15] : memref<2x32x8xf32, #tpu.memory_space<vmem>>, vector<1x32x8xf32>
    %30 = vector.shape_cast %29 : vector<1x32x8xf32> to vector<32x8xf32>
    %31 = vector.shape_cast %28 : vector<32x8xf32> to vector<1x32x8xf32>
    tpu.vector_store %arg6[%c0_13, %c0_14, %c0_15], %31 {strides = array<i32>} : memref<2x32x8xf32, #tpu.memory_space<vmem>>, vector<1x32x8xf32>,
    %cst_16 = arith.constant dense<0.000000e+00> : vector<32xf32>
    %32 = vector.multi_reduction <add>, %28, %cst_16 [1] : vector<32x8xf32> to vector<32xf32>
    %33 = vector.shape_cast %32 : vector<32xf32> to vector<32x1xf32>
    %34 = arith.addf %10, %33 : vector<32x1xf32>
    %35 = arith.mulf %28, %28 : vector<32x8xf32>
    %cst_17 = arith.constant dense<0.000000e+00> : vector<32xf32>
    %36 = vector.multi_reduction <add>, %35, %cst_17 [1] : vector<32x8xf32> to vector<32xf32>
    %37 = vector.shape_cast %36 : vector<32xf32> to vector<32x1xf32>
    %38 = arith.addf %11, %37 : vector<32x1xf32>
    %cst_18 = arith.constant dense<0.000000e+00> : vector<8x8xf32>
    %39 = tpu.matmul %5, %5, %cst_18 {dimension_numbers = #tpu.dot_dimension_numbers<[0], [0], [1], [1], [0, 1, 1, 1], [], []>} : vector<32x8xf32>, vector<32x8xf32>, vector<8x8xf32> -> vector<8x8xf32>
    %cst_19 = arith.constant dense<0xFF800000> : vector<8xf32>
    %40 = vector.multi_reduction <maximumf>, %39, %cst_19 [1] : vector<8x8xf32> to vector<8xf32>
    %41 = vector.shape_cast %40 : vector<8xf32> to vector<8x1xf32>
    %42 = vector.broadcast %41 : vector<8x1xf32> to vector<8x8xf32>
    %43 = arith.subf %39, %42 : vector<8x8xf32>
    %44 = math.exp %43 : vector<8x8xf32>
    %cst_20 = arith.constant dense<0.000000e+00> : vector<8xf32>
    %45 = vector.multi_reduction <add>, %44, %cst_20 [1] : vector<8x8xf32> to vector<8xf32>
    %46 = vector.shape_cast %45 : vector<8xf32> to vector<8x1xf32>
    %47 = tpu.reciprocal %46 {approx = true} : vector<8x1xf32> -> vector<8x1xf32>
    %48 = vector.broadcast %47 : vector<8x1xf32> to vector<8x8xf32>
    %49 = arith.mulf %44, %48 : vector<8x8xf32>
    %50 = arith.truncf %49 : vector<8x8xf32> to vector<8x8xbf16>
    %51 = vector.extract_strided_slice %9 {offsets = [0, 8], sizes = [32, 8], strides = [1, 1]} : vector<32x16xf32> to vector<32x8xf32>
    %52 = arith.truncf %51 : vector<32x8xf32> to vector<32x8xbf16>
    %cst_21 = arith.constant dense<0.000000e+00> : vector<32x8xf32>
    %53 = tpu.matmul %52, %50, %cst_21 {dimension_numbers = #tpu.dot_dimension_numbers<[1], [1], [0], [0], [0, 0, 1, 0], [], []>} : vector<32x8xbf16>, vector<8x8xbf16>, vector<32x8xf32> -> vector<32x8xf32>
    %cst_22 = arith.constant 0.000000e+00 : f32
    %54 = vector.broadcast %cst_22 : f32 to vector<32x8xf32>
    %55 = arith.maximumf %53, %54 : vector<32x8xf32>
    %c1_23 = arith.constant 1 : index
    %c0_24 = arith.constant 0 : index
    %c0_25 = arith.constant 0 : index
    %56 = vector.load %arg6[%c1_23, %c0_24, %c0_25] : memref<2x32x8xf32, #tpu.memory_space<vmem>>, vector<1x32x8xf32>
    %57 = vector.shape_cast %56 : vector<1x32x8xf32> to vector<32x8xf32>
    %58 = vector.shape_cast %55 : vector<32x8xf32> to vector<1x32x8xf32>
    tpu.vector_store %arg6[%c1_23, %c0_24, %c0_25], %58 {strides = array<i32>} : memref<2x32x8xf32, #tpu.memory_space<vmem>>, vector<1x32x8xf32>,
    %cst_26 = arith.constant dense<0.000000e+00> : vector<32xf32>
    %59 = vector.multi_reduction <add>, %55, %cst_26 [1] : vector<32x8xf32> to vector<32xf32>
    %60 = vector.shape_cast %59 : vector<32xf32> to vector<32x1xf32>
    %61 = arith.addf %34, %60 : vector<32x1xf32>
    %62 = arith.mulf %55, %55 : vector<32x8xf32>
    %cst_27 = arith.constant dense<0.000000e+00> : vector<32xf32>
    %63 = vector.multi_reduction <add>, %62, %cst_27 [1] : vector<32x8xf32> to vector<32xf32>
    %64 = vector.shape_cast %63 : vector<32xf32> to vector<32x1xf32>
    %65 = arith.addf %38, %64 : vector<32x1xf32>
    %cst_28 = arith.constant 6.250000e-02 : f32
    %66 = vector.broadcast %cst_28 : f32 to vector<32x1xf32>
    %67 = arith.mulf %61, %66 : vector<32x1xf32>
    %cst_29 = arith.constant 6.250000e-02 : f32
    %68 = vector.broadcast %cst_29 : f32 to vector<32x1xf32>
    %69 = arith.mulf %65, %68 : vector<32x1xf32>
    %70 = arith.mulf %67, %67 : vector<32x1xf32>
    %71 = arith.subf %69, %70 : vector<32x1xf32>
    %cst_30 = arith.constant 0.000000e+00 : f32
    %72 = vector.broadcast %cst_30 : f32 to vector<32x1xf32>
    %73 = arith.maximumf %71, %72 : vector<32x1xf32>
    %c0_31 = arith.constant 0 : index
    %c0_32 = arith.constant 0 : index
    %74 = vector.load %arg3[%c0_31, %c0_32] : memref<32x1xf32, #tpu.memory_space<vmem>>, vector<32x1xf32>
    %cst_33 = arith.constant 9.99999974E-6 : f32
    %75 = vector.broadcast %cst_33 : f32 to vector<32x1xf32>
    %76 = arith.addf %73, %75 : vector<32x1xf32>
    %77 = math.rsqrt %76 : vector<32x1xf32>
    %78 = arith.mulf %74, %77 : vector<32x1xf32>
    %c0_34 = arith.constant 0 : index
    %c0_35 = arith.constant 0 : index
    %79 = vector.load %arg4[%c0_34, %c0_35] : memref<32x1xf32, #tpu.memory_space<vmem>>, vector<32x1xf32>
    %80 = arith.mulf %67, %78 : vector<32x1xf32>
    %81 = arith.subf %79, %80 : vector<32x1xf32>
    %c0_36 = arith.constant 0 : index
    %c0_37 = arith.constant 0 : index
    %c0_38 = arith.constant 0 : index
    %82 = vector.load %arg6[%c0_36, %c0_37, %c0_38] : memref<2x32x8xf32, #tpu.memory_space<vmem>>, vector<1x32x8xf32>
    %83 = vector.shape_cast %82 : vector<1x32x8xf32> to vector<32x8xf32>
    %84 = vector.broadcast %78 : vector<32x1xf32> to vector<32x8xf32>
    %85 = arith.mulf %83, %84 : vector<32x8xf32>
    %86 = vector.broadcast %81 : vector<32x1xf32> to vector<32x8xf32>
    %87 = arith.addf %85, %86 : vector<32x8xf32>
    %c0_39 = arith.constant 0 : index
    %c0_40 = arith.constant 0 : index
    %c0_41 = arith.constant 0 : index
    %88 = vector.load %arg5[%c0_39, %c0_40, %c0_41] : memref<2x32x8xf32, #tpu.memory_space<vmem>>, vector<1x32x8xf32>
    %89 = vector.shape_cast %88 : vector<1x32x8xf32> to vector<32x8xf32>
    %90 = vector.shape_cast %87 : vector<32x8xf32> to vector<1x32x8xf32>
    tpu.vector_store %arg5[%c0_39, %c0_40, %c0_41], %90 {strides = array<i32>} : memref<2x32x8xf32, #tpu.memory_space<vmem>>, vector<1x32x8xf32>,
    %c1_42 = arith.constant 1 : index
    %c0_43 = arith.constant 0 : index
    %c0_44 = arith.constant 0 : index
    %91 = vector.load %arg6[%c1_42, %c0_43, %c0_44] : memref<2x32x8xf32, #tpu.memory_space<vmem>>, vector<1x32x8xf32>
    %92 = vector.shape_cast %91 : vector<1x32x8xf32> to vector<32x8xf32>
    %93 = vector.broadcast %78 : vector<32x1xf32> to vector<32x8xf32>
    %94 = arith.mulf %92, %93 : vector<32x8xf32>
    %95 = vector.broadcast %81 : vector<32x1xf32> to vector<32x8xf32>
    %96 = arith.addf %94, %95 : vector<32x8xf32>
    %c1_45 = arith.constant 1 : index
    %c0_46 = arith.constant 0 : index
    %c0_47 = arith.constant 0 : index
    %97 = vector.load %arg5[%c1_45, %c0_46, %c0_47] : memref<2x32x8xf32, #tpu.memory_space<vmem>>, vector<1x32x8xf32>
    %98 = vector.shape_cast %97 : vector<1x32x8xf32> to vector<32x8xf32>
    %99 = vector.shape_cast %96 : vector<32x8xf32> to vector<1x32x8xf32>
    tpu.vector_store %arg5[%c1_45, %c0_46, %c0_47], %99 {strides = array<i32>} : memref<2x32x8xf32, #tpu.memory_space<vmem>>, vector<1x32x8xf32>,
    return
  }
  func.func @transform_0(%arg0: i32) -> (i32, i32, i32) {
    %c0_i32 = arith.constant 0 : i32
    %c0_i32_0 = arith.constant 0 : i32
    %c0_i32_1 = arith.constant 0 : i32
    %c0_i32_2 = arith.constant 0 : i32
    return %c0_i32, %c0_i32_0, %c0_i32_1 : i32, i32, i32
  }
  func.func @transform_1(%arg0: i32) -> (i32, i32) {
    %c0_i32 = arith.constant 0 : i32
    %c0_i32_0 = arith.constant 0 : i32
    %c0_i32_1 = arith.constant 0 : i32
    return %c0_i32, %c0_i32_0 : i32, i32
  }
  func.func @transform_2(%arg0: i32) -> (i32, i32) {
    %c0_i32 = arith.constant 0 : i32
    %c0_i32_0 = arith.constant 0 : i32
    %c0_i32_1 = arith.constant 0 : i32
    return %c0_i32, %c0_i32_0 : i32, i32
  }
  func.func @transform_3(%arg0: i32) -> (i32, i32) {
    %c0_i32 = arith.constant 0 : i32
    %c0_i32_0 = arith.constant 0 : i32
    %c0_i32_1 = arith.constant 0 : i32
    return %c0_i32, %c0_i32_0 : i32, i32
  }
  func.func @transform_4(%arg0: i32) -> (i32, i32, i32) {
    %c0_i32 = arith.constant 0 : i32
    %c0_i32_0 = arith.constant 0 : i32
    %c0_i32_1 = arith.constant 0 : i32
    %c0_i32_2 = arith.constant 0 : i32
    return %c0_i32, %c0_i32_0, %c0_i32_1 : i32, i32, i32
  }
}

</mosaic_0001>

<bundles_post_ra>
// kernel: tpu_custom_call.1
= control target key start
LH: loop header
LB: loop body
LE: loop exit
PB: predicated region body
PF: predicated region fallthrough
CT: control target
= control target key end

     0   :  { %s812_s7 = smov 8   ;;  %vm68_vm0 = vcmask 261120   ;;  %vm43_vm1 = vcmask 64512   ;;  %v813_v24 = vmov 0.0|0.0   ;;  %vm814_vm2 = vmmov 0   ;;  %s982_s0 = inlined_call_operand.vmem [shape: f32[2,32,8], index: 0, kind: input, shape index: {}]   ;;  %s983_s1 = inlined_call_operand.vmem [shape: f32[32,32], index: 1, kind: input, shape index: {}]   ;;  %s984_s2 = inlined_call_operand.vmem [shape: f32[32,1], index: 2, kind: input, shape index: {}]   ;;  %s985_s3 = inlined_call_operand.vmem [shape: f32[32,1], index: 3, kind: input, shape index: {}]   ;;  %s986_s4 = inlined_call_operand.vmem [shape: f32[2,32,8], index: 4, kind: output, shape index: {}]  }
   0x1   :  { %v696_v0 = vld [vmem:[%s982_s0 + $0x20] sm:$0xff]  ;;  %v697_v1 = vld [vmem:[%s982_s0 + $0x28] sm:$0xff]  ;;  %v698_v2 = vld [vmem:[%s982_s0 + $0x30] sm:$0xff]  ;;  %v815_v25 = vmov 0.0  }
   0x2   :  { %v35_v3 = vpack.c.bf16 %v697_v1, %v696_v0  ;;  %v699_v4 = vld [vmem:[%s982_s0 + $0x38] sm:$0xff]  ;;  %v18_v5 = vld [vmem:[%s983_s1] sm:$0xff]  ;;  %v19_v6 = vld [vmem:[%s983_s1 + $0x8] sm:$0xff] }
   0x3   :  { %v22_v7 = vpack.c.bf16 %v19_v6, %v18_v5  ;;  %v20_v8 = vld [vmem:[%s983_s1 + $0x10] sm:$0xff]  ;;  %v21_v9 = vld [vmem:[%s983_s1 + $0x18] sm:$0xff]  ;;  %v24_v10 = vld [vmem:[%s982_s0] sm:$0xff]  ;;  %v36_v11 = vpack.c.bf16 %v699_v4, %v698_v2 }
   0x4   :  { %39 = vrot.lane.b32.xlu0 %v35_v3, %s812_s7  ;;  %v25_v12 = vld [vmem:[%s982_s0 + $0x8] sm:$0xff]  ;;  %v26_v13 = vld [vmem:[%s982_s0 + $0x10] sm:$0xff]  ;;  %v27_v14 = vld [vmem:[%s982_s0 + $0x18] sm:$0xff]  ;;  %v23_v15 = vpack.c.bf16 %v21_v9, %v20_v8  ;;  %s816_s0 = smov 120  }
   0x5   :  { %52 = vxpose.xlu1.c.b16.start [1/2] (short) (narrow) %v22_v7, 32  ;;  %v33_v16 = vpack.c.bf16 %v25_v12, %v24_v10  ;;  %v34_v17 = vpack.c.bf16 %v27_v14, %v26_v13 }
   0x8   :  { %41 = vrot.lane.b32.xlu0 %v36_v11, %s812_s7 }
   0x9   :  { %53 = vxpose.xlu1.c.b16.end [2/2] (short) (narrow) %v23_v15, 32 }
  0x13   :  { %345 = vxpose.xlu1.b32.start [1/4] (short) (narrow) %v696_v0, 8 }
  0x17   :  { %346 = vxpose.xlu1.b32.cont [2/4] (short) (narrow) %v697_v1, 8 }
  0x1b   :  { %347 = vxpose.xlu1.b32.cont [3/4] (short) (narrow) %v698_v2, 8 }
  0x1f   :  { %348 = vxpose.xlu1.b32.end [4/4] (short) (narrow) %v699_v4, 8 }
  0x26   :  { %124 = vxpose.xlu0.b32.start [1/4] (short) (narrow) %v24_v10, 8 }
  0x2a   :  { %125 = vxpose.xlu0.b32.cont [2/4] (short) (narrow) %v25_v12, 8 }
  0x2e   :  { %126 = vxpose.xlu0.b32.cont [3/4] (short) (narrow) %v26_v13, 8 }
  0x32   :  { %127 = vxpose.xlu0.b32.end [4/4] (short) (narrow) %v27_v14, 8 }
  0x6b   :  { %v60_v18 = vpop.trf.xlu1 }
  0x6c   :  { %736 = vmatprep.mubr.msk.bf16.mxu1 %vm68_vm0, %v60_v18 }
  0x6f   :  { %v61_v23 = vpop.trf.xlu1 }
  0x76   :  { %v40_v19 = vpop.permute.xlu0 %39 }
  0x77   :  { %v46_v20 = vsel %vm43_vm1, %v33_v16, %v40_v19 }
  0x78   :  { %732 = vmatprep.subr.bf16.mxu1 %v46_v20 }
  0x79   :  { %733 = vmatpush3.bf16.msra.mxu1 %v46_v20 }
  0x7a   :  { %v42_v21 = vpop.permute.xlu0 %41 }
  0x7b   :  { %v50_v22 = vsel %vm43_vm1, %v34_v17, %v42_v21 }
  0x7c   :  { %734 = vmatprep.subr.bf16.mxu1 %v50_v22 }
  0x7d   :  { %735 = vmatpush3.bf16.msra.mxu1 %v50_v22 }
  0x7e   :  { %774 = vmatprep.subr.bf16.mxu1 %v813_v24 }
  0x80   :  { %737 = vmatmul.mubr.msk.bf16.vlgmr.msra.gmra.mrb[0].mxu1 %vm68_vm0, %v61_v23 }
  0x81   :  { %776 = vmatpush3.bf16.msra.mxu1 %v33_v16  ;;  %748 = vmatprep.mubr.msk.f32.mxu1 %vm814_vm2, %v815_v25 }
  0x82   :  { %777 = vmatprep.subr.bf16.mxu1 %v813_v24 }
  0x85   :  { %779 = vmatpush3.bf16.msra.mxu1 %v34_v17 }
  0x86   :  { %780 = vmatprep.subr.bf16.mxu1 %v813_v24 }
  0x93   :  { %v361_v27 = vpop.trf.xlu1 }
  0xa6   :  { %v140_v26 = vpop.trf.xlu0 }
  0xa7   :  { %749 = vmatmul.mubr.msk.f32.vlgmr.msra.gmra.mrb[4].mxu1 %vm68_vm0, %v140_v26 }
  0xa8   :  { %782 = vmatpush3.bf16.msra.mxu1 %v35_v3  ;;  %765 = vmatprep.mubr.msk.f32.mxu1 %vm814_vm2, %v815_v25 }
  0xa9   :  { %783 = vmatprep.subr.bf16.mxu1 %v813_v24 }
  0xac   :  { %785 = vmatpush3.bf16.msra.mxu1 %v36_v11 }
  0xaf   :  { %766 = vmatmul.mubr.msk.f32.vlgmr.msra.gmra.mrb[6].mxu1 %vm68_vm0, %v361_v27 }
 0x153   :  { %v738_v28 = vpop.f32.mrb[0].mxu1 }
 0x154   :  { %v109_v29 = vpop.f32.mrb[1].mxu1 }
 0x155   :  { %v739_v30 = vpop.f32.mrb[2].mxu1 }
 0x156   :  { %v242_v31 = vpack.c.bf16 %v739_v30, %v738_v28  ;;  %v112_v32 = vpop.f32.mrb[3].mxu1 }
 0x157   :  { %v241_v33 = vpack.c.bf16 %v112_v32, %v109_v29 }
 0x159   :  { %753 = vmatprep.mubr.msk.bf16.mxu0 %vm43_vm1, %v241_v33 }
 0x17a   :  { %v225_v34 = vpop.f32.mrb[4].mxu1 }
 0x17b   :  { %v750_v35 = vpop.f32.mrb[5].mxu1  ;;  %v229_v36 = vsel %vm43_vm1, %v225_v34, -inf }
 0x17c   :  { %230 = vmax.xlane.f32.xlu1 %v229_v36 }
 0x182   :  { %v446_v37 = vpop.f32.mrb[6].mxu1 }
 0x183   :  { %v450_v38 = vsel %vm43_vm1, %v446_v37, -inf  ;;  %v767_v39 = vpop.f32.mrb[7].mxu1 }
 0x184   :  { %451 = vmax.xlane.f32.xlu0 %v450_v38  ;;  %v817_v38 = vmov 0  }
 0x185   :  { %794 = vset.pattern.permute.xlu0 %v817_v38  ;;  %795 = vset.pattern.permute.xlu1 %v817_v38 }
 0x209   :  { %v231_v40 = vpop.xlane.xlu1 %230 }
 0x20a   :  { %v232_v41 = vsub.f32 %v225_v34, %v231_v40 }
 0x20c   :  { %v233_v42 = vmul.f32 1.442695, %v232_v41 }
 0x20e   :  { %796 = vpow2.f32 %v233_v42 }
 0x211   :  { %v452_v43 = vpop.xlane.xlu0 %451 }
 0x212   :  { %v453_v44 = vsub.f32 %v446_v37, %v452_v43 }
 0x214   :  { %v454_v45 = vmul.f32 1.442695, %v453_v44 }
 0x216   :  { %798 = vpow2.f32 %v454_v45 }
 0x218   :  { %v797_v46 = vpop.eup %796 }
 0x219   :  { %v235_v47 = vsel %vm43_vm1, %v797_v46, 0.0 }
 0x21a   :  { %236 = vadd.xlane.f32.xlu1 %v235_v47 }
 0x220   :  { %v799_v48 = vpop.eup %798 }
 0x221   :  { %v456_v49 = vsel %vm43_vm1, %v799_v48, 0.0 }
 0x222   :  { %457 = vadd.xlane.f32.xlu1 %v456_v49 }
 0x233   :  { %464 = vrot.lane.b32.xlu1 %v241_v33, %s816_s0 }
 0x237   :  { %466 = vrot.lane.b32.xlu1 %v242_v31, %s816_s0 }
 0x2a7   :  { %v237_v50 = vpop.xlane.xlu1 %236 }
 0x2a8   :  { %800 = vrcp.f32 %v237_v50 }
 0x2af   :  { %v458_v51 = vpop.xlane.xlu1 %457 }
 0x2b0   :  { %802 = vrcp.f32 %v458_v51 }
 0x2b2   :  { %v801_v52 = vpop.eup %800 }
 0x2b3   :  { %v239_v53 = vmul.f32 %v801_v52, %v797_v46  ;;  %v465_v59 = vpop.permute.xlu1 %464 }
 0x2b5   :  { %v240_v54 = vpack.c.bf16 %v239_v53, %v239_v53 }
 0x2b7   :  { %786 = vmatprep.subr.msk.bf16.mxu0 %vm43_vm1, %v240_v54  ;;  %v250_v55 = vsel %vm43_vm1, %v240_v54, 0  ;;  %v467_v61 = vpop.permute.xlu1 %466 }
 0x2b8   :  { %752 = vmatpush3.bf16.xpose.msra.mxu0 %v250_v55 }
 0x2ba   :  { %v803_v56 = vpop.eup %802 }
 0x2bb   :  { %v460_v57 = vmul.f32 %v803_v56, %v799_v48 }
 0x2bd   :  { %v461_v58 = vpack.c.bf16 %v460_v57, %v460_v57 }
 0x2bf   :  { %787 = vmatprep.subr.msk.bf16.mxu0 %vm43_vm1, %v461_v58  ;;  %754 = vmatmul.mubr.msk.bf16.vlgmr.msra.gmra.mrb[0].mxu0 %vm43_vm1, %v242_v31  ;;  %v475_v60 = vsel %vm43_vm1, %v461_v58, 0 }
 0x2c0   :  { %769 = vmatpush3.bf16.xpose.msra.mxu0 %v475_v60  ;;  %770 = vmatprep.mubr.msk.bf16.mxu0 %vm43_vm1, %v465_v59 }
 0x2c7   :  { %771 = vmatmul.mubr.msk.bf16.vlgmr.msra.gmra.mrb[4].mxu0 %vm43_vm1, %v467_v61 }
 0x392   :  { %v755_v62 = vpop.f32.mrb[0].mxu0 }
 0x393   :  { %v303_v63 = vmax.f32 %v755_v62, 0.0  ;;  %v286_v0 = vpop.f32.mrb[1].mxu0 }
 0x394   :  { %v301_v1 = vmax.f32 %v286_v0, 0.0  ;;  %v756_v2 = vpop.f32.mrb[2].mxu0 }
 0x395   :  { %307 = vst.msk [vmem:[#allocation2 + $0x10] sm:$0xff] %vm43_vm1, %v303_v63  ;;  %v304_v3 = vmax.f32 %v756_v2, 0.0  ;;  %v289_v4 = vpop.f32.mrb[3].mxu0  ;;  %v315_v5 = vsel %vm43_vm1, %v303_v63, 0.0  ;;  %v327_v19 = vmul.f32 %v303_v63, %v303_v63 }
 0x396   :  { %305 = vst.msk [vmem:[#allocation2] sm:$0xff] %vm43_vm1, %v301_v1  ;;  %v302_v6 = vmax.f32 %v289_v4, 0.0  ;;  %316 = vadd.xlane.f32.xlu0 %v315_v5  ;;  %v309_v9 = vsel %vm43_vm1, %v301_v1, 0.0  ;;  %v325_v23 = vmul.f32 %v301_v1, %v301_v1 }
 0x397   :  { %308 = vst.msk [vmem:[#allocation2 + $0x18] sm:$0xff] %vm43_vm1, %v304_v3  ;;  %v328_v8 = vmul.f32 %v304_v3, %v304_v3  ;;  %v318_v18 = vsel %vm43_vm1, %v304_v3, 0.0  ;;  %v335_v22 = vsel %vm43_vm1, %v327_v19, 0.0 }
 0x398   :  { %306 = vst.msk [vmem:[#allocation2 + $0x8] sm:$0xff] %vm43_vm1, %v302_v6  ;;  %v312_v7 = vsel %vm43_vm1, %v302_v6, 0.0  ;;  %v329_v26 = vsel %vm43_vm1, %v325_v23, 0.0  ;;  %v326_v27 = vmul.f32 %v302_v6, %v302_v6  ;;  %v591_v23 = vld [vmem:[%s984_s2] sm:$0xff] }
 0x399   :  { %313 = vadd.xlane.f32.xlu1 %v312_v7  ;;  %v338_v15 = vsel %vm43_vm1, %v328_v8, 0.0 }
 0x39a   :  { %310 = vadd.xlane.f32.xlu0 %v309_v9  ;;  %v772_v10 = vpop.f32.mrb[4].mxu0  ;;  %v332_v29 = vsel %vm43_vm1, %v326_v27, 0.0 }
 0x39b   :  { %v528_v11 = vmax.f32 %v772_v10, 0.0  ;;  %v511_v12 = vpop.f32.mrb[5].mxu0 }
 0x39c   :  { %v526_v13 = vmax.f32 %v511_v12, 0.0  ;;  %v773_v14 = vpop.f32.mrb[6].mxu0 }
 0x39d   :  { %533 = vst.msk [vmem:[#allocation2 + $0x30] sm:$0xff] %vm43_vm1, %v528_v11  ;;  %v529_v16 = vmax.f32 %v773_v14, 0.0  ;;  %339 = vadd.xlane.f32.xlu1 %v338_v15  ;;  %v514_v17 = vpop.f32.mrb[7].mxu0  ;;  %v541_v30 = vsel %vm43_vm1, %v528_v11, 0.0  ;;  %v553_v36 = vmul.f32 %v528_v11, %v528_v11 }
 0x39e   :  { %531 = vst.msk [vmem:[#allocation2 + $0x20] sm:$0xff] %vm43_vm1, %v526_v13  ;;  %v527_v20 = vmax.f32 %v514_v17, 0.0  ;;  %319 = vadd.xlane.f32.xlu0 %v318_v18  ;;  %v535_v31 = vsel %vm43_vm1, %v526_v13, 0.0  ;;  %v551_v34 = vmul.f32 %v526_v13, %v526_v13 }
 0x39f   :  { %534 = vst.msk [vmem:[#allocation2 + $0x38] sm:$0xff] %vm43_vm1, %v529_v16  ;;  %v554_v25 = vmul.f32 %v529_v16, %v529_v16  ;;  %v544_v32 = vsel %vm43_vm1, %v529_v16, 0.0  ;;  %v561_v37 = vsel %vm43_vm1, %v553_v36, 0.0  ;;  %v609_v36 = vld [vmem:[%s985_s3 + $0x10] sm:$0xff] }
 0x3a0   :  { %532 = vst.msk [vmem:[#allocation2 + $0x28] sm:$0xff] %vm43_vm1, %v527_v20  ;;  %v552_v21 = vmul.f32 %v527_v20, %v527_v20  ;;  %v538_v33 = vsel %vm43_vm1, %v527_v20, 0.0  ;;  %v555_v35 = vsel %vm43_vm1, %v551_v34, 0.0 }
 0x3a1   :  { %v564_v28 = vsel %vm43_vm1, %v554_v25, 0.0 }
 0x3a2   :  { %336 = vadd.xlane.f32.xlu0 %v335_v22  ;;  %v558_v24 = vsel %vm43_vm1, %v552_v21, 0.0 }
 0x3a3   :  { %559 = vadd.xlane.f32.xlu1 %v558_v24 }
 0x3a6   :  { %330 = vadd.xlane.f32.xlu0 %v329_v26  ;;  %v593_v26 = vld [vmem:[%s984_s2 + $0x10] sm:$0xff] }
 0x3a7   :  { %565 = vadd.xlane.f32.xlu1 %v564_v28 }
 0x3aa   :  { %333 = vadd.xlane.f32.xlu0 %v332_v29 }
 0x3ae   :  { %542 = vadd.xlane.f32.xlu0 %v541_v30  ;;  %v594_v30 = vld [vmem:[%s984_s2 + $0x18] sm:$0xff] }
 0x3b2   :  { %536 = vadd.xlane.f32.xlu0 %v535_v31 }
 0x3b6   :  { %545 = vadd.xlane.f32.xlu0 %v544_v32 }
 0x3ba   :  { %539 = vadd.xlane.f32.xlu0 %v538_v33  ;;  %v592_v33 = vld [vmem:[%s984_s2 + $0x8] sm:$0xff] }
 0x3be   :  { %556 = vadd.xlane.f32.xlu0 %v555_v35 }
 0x3c2   :  { %562 = vadd.xlane.f32.xlu0 %v561_v37 }
 0x423   :  { %v317_v39 = vpop.xlane.xlu0 %316 }
 0x426   :  { %v314_v44 = vpop.xlane.xlu1 %313 }
 0x427   :  { %v311_v40 = vpop.xlane.xlu0 %310 }
 0x42a   :  { %v340_v47 = vpop.xlane.xlu1 %339 }
 0x42b   :  { %v320_v41 = vpop.xlane.xlu0 %319 }
 0x42f   :  { %v337_v42 = vpop.xlane.xlu0 %336 }
 0x430   :  { %v560_v49 = vpop.xlane.xlu1 %559 }
 0x433   :  { %v331_v43 = vpop.xlane.xlu0 %330 }
 0x434   :  { %v566_v52 = vpop.xlane.xlu1 %565 }
 0x435   :  { %v570_v57 = vadd.f32 %v566_v52, %v340_v47 }
 0x437   :  { %v334_v45 = vpop.xlane.xlu0 %333  ;;  %v578_v0 = vmul.f32 0.0625, %v570_v57 }
 0x438   :  { %v568_v1 = vadd.f32 %v560_v49, %v334_v45  ;;  %v610_v45 = vld [vmem:[%s985_s3 + $0x18] sm:$0xff] }
 0x43a   :  { %v576_v10 = vmul.f32 0.0625, %v568_v1  ;;  %v620_v1 = vld [vmem:[#allocation2 + $0x8] sm:$0xff] }
 0x43b   :  { %v543_v46 = vpop.xlane.xlu0 %542 }
 0x43c   :  { %v549_v58 = vadd.f32 %v543_v46, %v317_v39  ;;  %v607_v39 = vld [vmem:[%s985_s3] sm:$0xff] }
 0x43e   :  { %v573_v2 = vmul.f32 0.0625, %v549_v58 }
 0x43f   :  { %v537_v48 = vpop.xlane.xlu0 %536 }
 0x440   :  { %v547_v53 = vadd.f32 %v537_v48, %v311_v40  ;;  %v581_v11 = vmul.f32 %v573_v2, %v573_v2 }
 0x442   :  { %v571_v59 = vmul.f32 0.0625, %v547_v53 }
 0x443   :  { %v546_v50 = vpop.xlane.xlu0 %545 }
 0x444   :  { %v550_v51 = vadd.f32 %v546_v50, %v320_v41  ;;  %v579_v3 = vmul.f32 %v571_v59, %v571_v59  ;;  %v621_v50 = vld [vmem:[#allocation2 + $0x10] sm:$0xff] }
 0x446   :  { %v921_v55 = vmul.f32 0.0625, %v550_v51  ;;  %v677_v51 = vld [vmem:[#allocation2 + $0x30] sm:$0xff] }
 0x447   :  { %v540_v54 = vpop.xlane.xlu0 %539 }
 0x448   :  { %v548_v56 = vadd.f32 %v540_v54, %v314_v44  ;;  %v582_v61 = vmul.f32 %v921_v55, %v921_v55 }
 0x44a   :  { %v572_v62 = vmul.f32 0.0625, %v548_v56  ;;  %v586_v6 = vsub.f32 %v578_v0, %v582_v61 }
 0x44b   :  { %v557_v60 = vpop.xlane.xlu0 %556 }
 0x44c   :  { %v567_v63 = vadd.f32 %v557_v60, %v331_v43  ;;  %v580_v7 = vmul.f32 %v572_v62, %v572_v62  ;;  %v590_v14 = vmax.f32 %v586_v6, 0.0 }
 0x44e   :  { %v575_v4 = vmul.f32 0.0625, %v567_v63  ;;  %v584_v15 = vsub.f32 %v576_v10, %v580_v7  ;;  %v598_v19 = vadd.f32 1e-05, %v590_v14 }
 0x44f   :  { %v563_v5 = vpop.xlane.xlu0 %562 }
 0x450   :  { %v583_v8 = vsub.f32 %v575_v4, %v579_v3  ;;  %v569_v9 = vadd.f32 %v563_v5, %v337_v42  ;;  %v588_v20 = vmax.f32 %v584_v15, 0.0  ;;  %v608_v42 = vld [vmem:[%s985_s3 + $0x8] sm:$0xff] }
 0x452   :  { %v587_v12 = vmax.f32 %v583_v8, 0.0  ;;  %v577_v13 = vmul.f32 0.0625, %v569_v9  ;;  %v596_v22 = vadd.f32 1e-05, %v588_v20  ;;  %v622_v8 = vld [vmem:[#allocation2 + $0x18] sm:$0xff] }
 0x453   :  { %v678_v9 = vld [vmem:[#allocation2 + $0x38] sm:$0xff] }
 0x454   :  { %v595_v16 = vadd.f32 1e-05, %v587_v12  ;;  %v585_v17 = vsub.f32 %v577_v13, %v581_v11 }
 0x456   :  { %804 = vrsqrt.f32 %v595_v16  ;;  %v589_v18 = vmax.f32 %v585_v17, 0.0 }
 0x458   :  { %v597_v21 = vadd.f32 1e-05, %v589_v18 }
 0x45a   :  { %806 = vrsqrt.f32 %v597_v21 }
 0x45b   :  { %808 = vrsqrt.f32 %v598_v19 }
 0x45c   :  { %810 = vrsqrt.f32 %v596_v22 }
 0x460   :  { %v805_v24 = vpop.eup %804 }
 0x461   :  { %v603_v25 = vmul.f32 %v805_v24, %v591_v23 }
 0x463   :  { %625 = vperm.xlu0 %794, %v603_v25   ;;  %v611_v38 = vmul.f32 %v603_v25, %v571_v59  ;;  %v675_v59 = vld [vmem:[#allocation2 + $0x20] sm:$0xff] }
 0x464   :  { %v807_v27 = vpop.eup %806 }
 0x465   :  { %v605_v28 = vmul.f32 %v807_v27, %v593_v26  ;;  %v809_v29 = vpop.eup %808  ;;  %v615_v41 = vsub.f32 %v607_v39, %v611_v38 }
 0x466   :  { %v606_v31 = vmul.f32 %v809_v29, %v594_v30  ;;  %v811_v32 = vpop.eup %810 }
 0x467   :  { %635 = vperm.xlu1 %795, %v605_v28   ;;  %v604_v34 = vmul.f32 %v811_v32, %v592_v33  ;;  %v613_v35 = vmul.f32 %v605_v28, %v573_v2  ;;  %v676_v2 = vld [vmem:[#allocation2 + $0x28] sm:$0xff] }
 0x468   :  { %v614_v43 = vmul.f32 %v606_v31, %v921_v55  ;;  %v619_v55 = vld [vmem:[#allocation2] sm:$0xff] }
 0x469   :  { %v617_v37 = vsub.f32 %v609_v36, %v613_v35  ;;  %v612_v40 = vmul.f32 %v604_v34, %v572_v62 }
 0x46a   :  { %v618_v46 = vsub.f32 %v610_v45, %v614_v43 }
 0x46b   :  { %640 = vperm.xlu1 %795, %v606_v31   ;;  %v616_v44 = vsub.f32 %v608_v42, %v612_v40 }
 0x46f   :  { %630 = vperm.xlu1 %795, %v604_v34  }
 0x473   :  { %659 = vperm.xlu1 %795, %v617_v37  }
 0x477   :  { %649 = vperm.xlu1 %795, %v615_v41  }
 0x47b   :  { %654 = vperm.xlu1 %795, %v616_v44  }
 0x47f   :  { %664 = vperm.xlu1 %795, %v618_v46  }
 0x4e2   :  { %v626_v54 = vpop.permute.xlu0 %625 }
 0x4e3   :  { %v643_v60 = vmul.f32 %v626_v54, %v619_v55  ;;  %v679_v61 = vmul.f32 %v675_v59, %v626_v54 }
 0x4e6   :  { %v636_v47 = vpop.permute.xlu1 %635 }
 0x4e7   :  { %v645_v52 = vmul.f32 %v636_v47, %v621_v50  ;;  %v681_v53 = vmul.f32 %v677_v51, %v636_v47 }
 0x4ea   :  { %v641_v48 = vpop.permute.xlu1 %640 }
 0x4eb   :  { %v646_v10 = vmul.f32 %v641_v48, %v622_v8  ;;  %v682_v11 = vmul.f32 %v678_v9, %v641_v48 }
 0x4ee   :  { %v631_v49 = vpop.permute.xlu1 %630 }
 0x4ef   :  { %v644_v3 = vmul.f32 %v631_v49, %v620_v1  ;;  %v680_v4 = vmul.f32 %v676_v2, %v631_v49 }
 0x4f2   :  { %v660_v56 = vpop.permute.xlu1 %659 }
 0x4f3   :  { %v669_v57 = vadd.f32 %v660_v56, %v645_v52  ;;  %v685_v58 = vadd.f32 %v681_v53, %v660_v56 }
 0x4f5   :  { %673 = vst.msk [vmem:[%s986_s4 + $0x10] sm:$0xff] %vm43_vm1, %v669_v57  ;;  %710 = vst.msk [vmem:[%s986_s4 + $0x30] sm:$0xff] %vm43_vm1, %v685_v58 }
 0x4f6   :  { %v650_v62 = vpop.permute.xlu1 %649 }
 0x4f7   :  { %v667_v63 = vadd.f32 %v650_v62, %v643_v60  ;;  %v683_v0 = vadd.f32 %v679_v61, %v650_v62 }
 0x4f9   :  { %671 = vst.msk [vmem:[%s986_s4] sm:$0xff] %vm43_vm1, %v667_v63  ;;  %708 = vst.msk [vmem:[%s986_s4 + $0x20] sm:$0xff] %vm43_vm1, %v683_v0 }
 0x4fa   :  { %v655_v5 = vpop.permute.xlu1 %654 }
 0x4fb   :  { %v668_v6 = vadd.f32 %v655_v5, %v644_v3  ;;  %v684_v7 = vadd.f32 %v680_v4, %v655_v5 }
 0x4fd   :  { %672 = vst.msk [vmem:[%s986_s4 + $0x8] sm:$0xff] %vm43_vm1, %v668_v6  ;;  %709 = vst.msk [vmem:[%s986_s4 + $0x28] sm:$0xff] %vm43_vm1, %v684_v7 }
 0x4fe   :  { %v665_v12 = vpop.permute.xlu1 %664 }
 0x4ff   :  { %v670_v13 = vadd.f32 %v665_v12, %v646_v10  ;;  %v686_v14 = vadd.f32 %v682_v11, %v665_v12 }
 0x501   :  { %674 = vst.msk [vmem:[%s986_s4 + $0x18] sm:$0xff] %vm43_vm1, %v670_v13  ;;  %711 = vst.msk [vmem:[%s986_s4 + $0x38] sm:$0xff] %vm43_vm1, %v686_v14 }

</bundles_post_ra>
